<compile_context>
chip_gen: v7x
topology: tpu7x:2x2x1
jax: 0.10.0
libtpu: 0.0.40
codegen_flags: <defaults>
</compile_context>

<pallas_src>
import functools

import jax
import jax.numpy as jnp
from jax.experimental import pallas as pl
from jax.experimental.pallas import tpu as pltpu

HIDDEN_SIZES = [26] * 14
INPUT_SIZE = 4
OUTPUT_SIZE = 1
FEAT_PAD = 32   # hidden/output feature dims zero-padded to 32 sublanes
IN_PAD = 8      # input feature dim padded only to 8 sublanes (min f32 tile)


def mlp_kernel(x_ref, w_ref, out_ref, *, n_chunks):
    """Fused 15-layer MLP, batch-on-lanes, bias folded into the weights.

    x_ref  : (IN_PAD, TB) f32   rows 0..3 = features, row IN_PAD-1 == 1.0
    w_ref  : (L, FEAT_PAD, FEAT_PAD) compute dtype (f32 or bf16).
             Layer 0 uses columns [:IN_PAD] with its bias in column IN_PAD-1;
             layers 1.. use all columns with bias in column FEAT_PAD-1 and
             W[FEAT_PAD-1, FEAT_PAD-1] == 1 carries the ones-row forward.
             Zero padding is exact: padded rows stay 0 through every layer.
    out_ref: (1, TB) f32        valid output is row 0 (OUTPUT_SIZE == 1).
    """
    n_layers = w_ref.shape[0]
    in_pad = x_ref.shape[0]
    tb = x_ref.shape[1]
    cb = tb // n_chunks
    cdt = w_ref.dtype

    # Independent lane-chunks -> interleaved serial chains hide MXU fill/drain
    # and the per-layer ReLU/cast VPU work behind the other chunk's matmul.
    hs = [x_ref[:, c * cb:(c + 1) * cb].astype(cdt) for c in range(n_chunks)]

    # Layer 0: (FEAT_PAD, IN_PAD) @ (IN_PAD, cb); bias comes from the ones row.
    w0 = w_ref[0][:, :in_pad]
    hs = [jnp.maximum(
              jnp.dot(w0, h, preferred_element_type=jnp.float32), 0.0).astype(cdt)
          for h in hs]

    # Hidden layers 1 .. n_layers-2 (ReLU), fully unrolled.
    for i in range(1, n_layers - 1):
        wi = w_ref[i]
        hs = [jnp.maximum(
                  jnp.dot(wi, h, preferred_element_type=jnp.float32), 0.0).astype(cdt)
              for h in hs]

    # Output layer (no ReLU); lane-dense store of row 0.
    wl = w_ref[n_layers - 1]
    for c in range(n_chunks):
        z = jnp.dot(wl, hs[c], preferred_element_type=jnp.float32)
        out_ref[:, c * cb:(c + 1) * cb] = z[:1, :].astype(out_ref.dtype)


def make_params(key, input_size=INPUT_SIZE, hidden_sizes=HIDDEN_SIZES,
                output_size=OUTPUT_SIZE, dtype=jnp.float32):
    """torch.nn.Linear-style init; weights stored in torch layout (out, in)."""
    sizes = [input_size] + list(hidden_sizes) + [output_size]
    params = []
    for i in range(len(sizes) - 1):
        fan_in, fan_out = sizes[i], sizes[i + 1]
        key, kw, kb = jax.random.split(key, 3)
        bound = 1.0 / jnp.sqrt(jnp.asarray(fan_in, dtype))
        w = jax.random.uniform(kw, (fan_out, fan_in), dtype, -bound, bound)
        b = jax.random.uniform(kb, (fan_out,), dtype, -bound, bound)
        params.append((w, b))
    return params


def pack_params(params, *, feat_pad=FEAT_PAD, in_pad=IN_PAD, dtype=jnp.bfloat16):
    """Pack all layers into one (L, FP, FP) weight array with biases folded in.

    Layer 0's bias lives in column in_pad-1 (the input's ones row); every other
    layer's bias lives in column feat_pad-1.  W[i][feat_pad-1, bias_col] = 1 for
    all but the last layer so the ones row propagates (ReLU(1) == 1).
    """
    n = len(params)
    w_stack = jnp.zeros((n, feat_pad, feat_pad), dtype)
    for i, (w, b) in enumerate(params):
        o, k = w.shape
        bias_col = in_pad - 1 if i == 0 else feat_pad - 1
        w_stack = w_stack.at[i, :o, :k].set(w.astype(dtype))
        w_stack = w_stack.at[i, :o, bias_col].set(b.astype(dtype))
        if i < n - 1:
            w_stack = w_stack.at[i, feat_pad - 1, bias_col].set(1.0)
    return w_stack


def _round_up(x, m):
    return ((x + m - 1) // m) * m


@functools.partial(jax.jit, static_argnames=("tb",))
def traffic_model_forward(x, w_stack, *, tb=4096):
    """x: (B, 4) -> (B, 1). w_stack: packed (15, 32, 32) weights (bias folded).

    Compute precision follows w_stack.dtype (f32 = torch-exact, bf16 = fast MXU
    path); accumulation is always f32.
    """
    batch, in_size = x.shape
    n_layers, feat_pad, _ = w_stack.shape

    # Lane-aligned batch tiles.  Cap the tile at half the padded batch (once it
    # is >= 256) so the grid has >= 2 blocks and "parallel" can shard across
    # both TensorCores on v7x; otherwise use the largest tile that fits.
    b128 = _round_up(max(batch, 1), 128)
    tb_eff = min(_round_up(tb, 128), b128)
    if b128 >= 256:
        tb_eff = min(tb_eff, max(128, (b128 // 2) // 128 * 128))
    b_pad = _round_up(batch, tb_eff)
    n_chunks = 2 if tb_eff % 256 == 0 else 1

    # (B, 4) -> (IN_PAD, B_pad): features on sublanes, batch on lanes,
    # row IN_PAD-1 pinned to 1.0 (augmented-affine bias lane).
    x_t = jnp.zeros((IN_PAD, b_pad), jnp.float32)
    x_t = x_t.at[:in_size, :batch].set(x.T.astype(jnp.float32))
    x_t = x_t.at[IN_PAD - 1, :].set(1.0)

    grid = (b_pad // tb_eff,)
    out_t = pl.pallas_call(
        functools.partial(mlp_kernel, n_chunks=n_chunks),
        out_shape=jax.ShapeDtypeStruct((1, b_pad), jnp.float32),
        grid_spec=pltpu.PrefetchScalarGridSpec(
            num_scalar_prefetch=0,
            grid=grid,
            in_specs=[
                # activations: one lane-dense batch tile per grid step
                pl.BlockSpec((IN_PAD, tb_eff), lambda i: (0, i)),
                # packed weights: constant index_map -> fetched once, VMEM-resident
                pl.BlockSpec((n_layers, feat_pad, feat_pad), lambda i: (0, 0, 0)),
            ],
            out_specs=pl.BlockSpec((1, tb_eff), lambda i: (0, i)),
        ),
        compiler_params=pltpu.CompilerParams(
            dimension_semantics=("parallel",)),
    )(x_t, w_stack)

    # (1, B_pad) -> (B, 1)
    return out_t[:, :batch].T.astype(x.dtype)


def reference_forward(x, params):
    """Pure-JAX reference with torch semantics: y = x @ W.T + b, ReLU on hidden."""
    h = x.astype(jnp.float32)
    n = len(params)
    for i, (w, b) in enumerate(params):
        h = h @ w.T + b
        if i < n - 1:
            h = jnp.maximum(h, 0.0)
    return h.astype(x.dtype)


if __name__ == "__main__":
    key = jax.random.PRNGKey(0)
    k_x1, k_x2, k_p = jax.random.split(key, 3)
    params = make_params(k_p)

    w_f32 = pack_params(params, dtype=jnp.float32)     # torch-exact path
    w_bf16 = pack_params(params, dtype=jnp.bfloat16)   # fast MXU path

    # 1) f32-exact path, single-block grid.
    x1 = jax.random.normal(k_x1, (8, INPUT_SIZE), dtype=jnp.float32)
    out1 = jax.block_until_ready(traffic_model_forward(x1, w_f32))
    ref1 = reference_forward(x1, params)
    assert out1.shape == (8, OUTPUT_SIZE), out1.shape
    assert jnp.allclose(out1, ref1, atol=1e-5, rtol=1e-5)

    # 2) f32-exact path, multi-block grid (>=2 blocks for v7x) + 2-way
    #    lane-chunk interleave + ragged batch padding.
    x2 = jax.random.normal(k_x2, (600, INPUT_SIZE), dtype=jnp.float32)
    out2 = jax.block_until_ready(traffic_model_forward(x2, w_f32))
    ref2 = reference_forward(x2, params)
    assert out2.shape == (600, OUTPUT_SIZE), out2.shape
    assert jnp.allclose(out2, ref2, atol=1e-5, rtol=1e-5)

    # 3) bf16 MXU path (deployment precision; not bit-exact to torch).
    out3 = jax.block_until_ready(traffic_model_forward(x2, w_bf16))
    assert out3.shape == (600, OUTPUT_SIZE), out3.shape
    assert bool(jnp.all(jnp.isfinite(out3)))
    assert jnp.allclose(out3, ref2, atol=3e-2, rtol=5e-2)

    print("KERNEL_OK")
</pallas_src>

<mosaic_0001>
module attributes {stable_mosaic.version = 11 : i64} {
  func.func @mlp_kernel(%arg0: i32, %arg1: memref<8x128xf32, #tpu.memory_space<vmem>>, %arg2: memref<15x32x32xf32, #tpu.memory_space<vmem>>, %arg3: memref<1x128xf32, #tpu.memory_space<vmem>>) attributes {dimension_semantics = [#tpu.dimension_semantics<parallel>], iteration_bounds = array<i64: 1>, scalar_prefetch = 0 : i64, scratch_operands = 0 : i64, tpu.core_type = #tpu.core_type<tc>, window_params = [{transform_indices = @transform_0, window_bounds = array<i64: 8, 128>}, {pipeline_mode = #tpu.pipeline_mode<synchronous>, transform_indices = @transform_1, window_bounds = array<i64: 15, 32, 32>}, {transform_indices = @transform_2, window_bounds = array<i64: 1, 128>}]} {
    %c0 = arith.constant 0 : index
    %c0_0 = arith.constant 0 : index
    %0 = vector.load %arg1[%c0, %c0_0] : memref<8x128xf32, #tpu.memory_space<vmem>>, vector<8x128xf32>
    %c0_1 = arith.constant 0 : index
    %c0_2 = arith.constant 0 : index
    %c0_3 = arith.constant 0 : index
    %1 = vector.load %arg2[%c0_1, %c0_2, %c0_3] : memref<15x32x32xf32, #tpu.memory_space<vmem>>, vector<1x32x32xf32>
    %2 = vector.shape_cast %1 : vector<1x32x32xf32> to vector<32x32xf32>
    %3 = vector.extract_strided_slice %2 {offsets = [0, 0], sizes = [32, 8], strides = [1, 1]} : vector<32x32xf32> to vector<32x8xf32>
    %cst = arith.constant dense<0.000000e+00> : vector<32x128xf32>
    %4 = tpu.matmul %3, %0, %cst {dimension_numbers = #tpu.dot_dimension_numbers<[1], [0], [0], [1], [0, 0, 1, 1], [], []>} : vector<32x8xf32>, vector<8x128xf32>, vector<32x128xf32> -> vector<32x128xf32>
    %cst_4 = arith.constant 0.000000e+00 : f32
    %5 = vector.broadcast %cst_4 : f32 to vector<32x128xf32>
    %6 = arith.maximumf %4, %5 : vector<32x128xf32>
    %c1 = arith.constant 1 : index
    %c0_5 = arith.constant 0 : index
    %c0_6 = arith.constant 0 : index
    %7 = vector.load %arg2[%c1, %c0_5, %c0_6] : memref<15x32x32xf32, #tpu.memory_space<vmem>>, vector<1x32x32xf32>
    %8 = vector.shape_cast %7 : vector<1x32x32xf32> to vector<32x32xf32>
    %cst_7 = arith.constant dense<0.000000e+00> : vector<32x128xf32>
    %9 = tpu.matmul %8, %6, %cst_7 {dimension_numbers = #tpu.dot_dimension_numbers<[1], [0], [0], [1], [0, 0, 1, 1], [], []>} : vector<32x32xf32>, vector<32x128xf32>, vector<32x128xf32> -> vector<32x128xf32>
    %cst_8 = arith.constant 0.000000e+00 : f32
    %10 = vector.broadcast %cst_8 : f32 to vector<32x128xf32>
    %11 = arith.maximumf %9, %10 : vector<32x128xf32>
    %c2 = arith.constant 2 : index
    %c0_9 = arith.constant 0 : index
    %c0_10 = arith.constant 0 : index
    %12 = vector.load %arg2[%c2, %c0_9, %c0_10] : memref<15x32x32xf32, #tpu.memory_space<vmem>>, vector<1x32x32xf32>
    %13 = vector.shape_cast %12 : vector<1x32x32xf32> to vector<32x32xf32>
    %cst_11 = arith.constant dense<0.000000e+00> : vector<32x128xf32>
    %14 = tpu.matmul %13, %11, %cst_11 {dimension_numbers = #tpu.dot_dimension_numbers<[1], [0], [0], [1], [0, 0, 1, 1], [], []>} : vector<32x32xf32>, vector<32x128xf32>, vector<32x128xf32> -> vector<32x128xf32>
    %cst_12 = arith.constant 0.000000e+00 : f32
    %15 = vector.broadcast %cst_12 : f32 to vector<32x128xf32>
    %16 = arith.maximumf %14, %15 : vector<32x128xf32>
    %c3 = arith.constant 3 : index
    %c0_13 = arith.constant 0 : index
    %c0_14 = arith.constant 0 : index
    %17 = vector.load %arg2[%c3, %c0_13, %c0_14] : memref<15x32x32xf32, #tpu.memory_space<vmem>>, vector<1x32x32xf32>
    %18 = vector.shape_cast %17 : vector<1x32x32xf32> to vector<32x32xf32>
    %cst_15 = arith.constant dense<0.000000e+00> : vector<32x128xf32>
    %19 = tpu.matmul %18, %16, %cst_15 {dimension_numbers = #tpu.dot_dimension_numbers<[1], [0], [0], [1], [0, 0, 1, 1], [], []>} : vector<32x32xf32>, vector<32x128xf32>, vector<32x128xf32> -> vector<32x128xf32>
    %cst_16 = arith.constant 0.000000e+00 : f32
    %20 = vector.broadcast %cst_16 : f32 to vector<32x128xf32>
    %21 = arith.maximumf %19, %20 : vector<32x128xf32>
    %c4 = arith.constant 4 : index
    %c0_17 = arith.constant 0 : index
    %c0_18 = arith.constant 0 : index
    %22 = vector.load %arg2[%c4, %c0_17, %c0_18] : memref<15x32x32xf32, #tpu.memory_space<vmem>>, vector<1x32x32xf32>
    %23 = vector.shape_cast %22 : vector<1x32x32xf32> to vector<32x32xf32>
    %cst_19 = arith.constant dense<0.000000e+00> : vector<32x128xf32>
    %24 = tpu.matmul %23, %21, %cst_19 {dimension_numbers = #tpu.dot_dimension_numbers<[1], [0], [0], [1], [0, 0, 1, 1], [], []>} : vector<32x32xf32>, vector<32x128xf32>, vector<32x128xf32> -> vector<32x128xf32>
    %cst_20 = arith.constant 0.000000e+00 : f32
    %25 = vector.broadcast %cst_20 : f32 to vector<32x128xf32>
    %26 = arith.maximumf %24, %25 : vector<32x128xf32>
    %c5 = arith.constant 5 : index
    %c0_21 = arith.constant 0 : index
    %c0_22 = arith.constant 0 : index
    %27 = vector.load %arg2[%c5, %c0_21, %c0_22] : memref<15x32x32xf32, #tpu.memory_space<vmem>>, vector<1x32x32xf32>
    %28 = vector.shape_cast %27 : vector<1x32x32xf32> to vector<32x32xf32>
    %cst_23 = arith.constant dense<0.000000e+00> : vector<32x128xf32>
    %29 = tpu.matmul %28, %26, %cst_23 {dimension_numbers = #tpu.dot_dimension_numbers<[1], [0], [0], [1], [0, 0, 1, 1], [], []>} : vector<32x32xf32>, vector<32x128xf32>, vector<32x128xf32> -> vector<32x128xf32>
    %cst_24 = arith.constant 0.000000e+00 : f32
    %30 = vector.broadcast %cst_24 : f32 to vector<32x128xf32>
    %31 = arith.maximumf %29, %30 : vector<32x128xf32>
    %c6 = arith.constant 6 : index
    %c0_25 = arith.constant 0 : index
    %c0_26 = arith.constant 0 : index
    %32 = vector.load %arg2[%c6, %c0_25, %c0_26] : memref<15x32x32xf32, #tpu.memory_space<vmem>>, vector<1x32x32xf32>
    %33 = vector.shape_cast %32 : vector<1x32x32xf32> to vector<32x32xf32>
    %cst_27 = arith.constant dense<0.000000e+00> : vector<32x128xf32>
    %34 = tpu.matmul %33, %31, %cst_27 {dimension_numbers = #tpu.dot_dimension_numbers<[1], [0], [0], [1], [0, 0, 1, 1], [], []>} : vector<32x32xf32>, vector<32x128xf32>, vector<32x128xf32> -> vector<32x128xf32>
    %cst_28 = arith.constant 0.000000e+00 : f32
    %35 = vector.broadcast %cst_28 : f32 to vector<32x128xf32>
    %36 = arith.maximumf %34, %35 : vector<32x128xf32>
    %c7 = arith.constant 7 : index
    %c0_29 = arith.constant 0 : index
    %c0_30 = arith.constant 0 : index
    %37 = vector.load %arg2[%c7, %c0_29, %c0_30] : memref<15x32x32xf32, #tpu.memory_space<vmem>>, vector<1x32x32xf32>
    %38 = vector.shape_cast %37 : vector<1x32x32xf32> to vector<32x32xf32>
    %cst_31 = arith.constant dense<0.000000e+00> : vector<32x128xf32>
    %39 = tpu.matmul %38, %36, %cst_31 {dimension_numbers = #tpu.dot_dimension_numbers<[1], [0], [0], [1], [0, 0, 1, 1], [], []>} : vector<32x32xf32>, vector<32x128xf32>, vector<32x128xf32> -> vector<32x128xf32>
    %cst_32 = arith.constant 0.000000e+00 : f32
    %40 = vector.broadcast %cst_32 : f32 to vector<32x128xf32>
    %41 = arith.maximumf %39, %40 : vector<32x128xf32>
    %c8 = arith.constant 8 : index
    %c0_33 = arith.constant 0 : index
    %c0_34 = arith.constant 0 : index
    %42 = vector.load %arg2[%c8, %c0_33, %c0_34] : memref<15x32x32xf32, #tpu.memory_space<vmem>>, vector<1x32x32xf32>
    %43 = vector.shape_cast %42 : vector<1x32x32xf32> to vector<32x32xf32>
    %cst_35 = arith.constant dense<0.000000e+00> : vector<32x128xf32>
    %44 = tpu.matmul %43, %41, %cst_35 {dimension_numbers = #tpu.dot_dimension_numbers<[1], [0], [0], [1], [0, 0, 1, 1], [], []>} : vector<32x32xf32>, vector<32x128xf32>, vector<32x128xf32> -> vector<32x128xf32>
    %cst_36 = arith.constant 0.000000e+00 : f32
    %45 = vector.broadcast %cst_36 : f32 to vector<32x128xf32>
    %46 = arith.maximumf %44, %45 : vector<32x128xf32>
    %c9 = arith.constant 9 : index
    %c0_37 = arith.constant 0 : index
    %c0_38 = arith.constant 0 : index
    %47 = vector.load %arg2[%c9, %c0_37, %c0_38] : memref<15x32x32xf32, #tpu.memory_space<vmem>>, vector<1x32x32xf32>
    %48 = vector.shape_cast %47 : vector<1x32x32xf32> to vector<32x32xf32>
    %cst_39 = arith.constant dense<0.000000e+00> : vector<32x128xf32>
    %49 = tpu.matmul %48, %46, %cst_39 {dimension_numbers = #tpu.dot_dimension_numbers<[1], [0], [0], [1], [0, 0, 1, 1], [], []>} : vector<32x32xf32>, vector<32x128xf32>, vector<32x128xf32> -> vector<32x128xf32>
    %cst_40 = arith.constant 0.000000e+00 : f32
    %50 = vector.broadcast %cst_40 : f32 to vector<32x128xf32>
    %51 = arith.maximumf %49, %50 : vector<32x128xf32>
    %c10 = arith.constant 10 : index
    %c0_41 = arith.constant 0 : index
    %c0_42 = arith.constant 0 : index
    %52 = vector.load %arg2[%c10, %c0_41, %c0_42] : memref<15x32x32xf32, #tpu.memory_space<vmem>>, vector<1x32x32xf32>
    %53 = vector.shape_cast %52 : vector<1x32x32xf32> to vector<32x32xf32>
    %cst_43 = arith.constant dense<0.000000e+00> : vector<32x128xf32>
    %54 = tpu.matmul %53, %51, %cst_43 {dimension_numbers = #tpu.dot_dimension_numbers<[1], [0], [0], [1], [0, 0, 1, 1], [], []>} : vector<32x32xf32>, vector<32x128xf32>, vector<32x128xf32> -> vector<32x128xf32>
    %cst_44 = arith.constant 0.000000e+00 : f32
    %55 = vector.broadcast %cst_44 : f32 to vector<32x128xf32>
    %56 = arith.maximumf %54, %55 : vector<32x128xf32>
    %c11 = arith.constant 11 : index
    %c0_45 = arith.constant 0 : index
    %c0_46 = arith.constant 0 : index
    %57 = vector.load %arg2[%c11, %c0_45, %c0_46] : memref<15x32x32xf32, #tpu.memory_space<vmem>>, vector<1x32x32xf32>
    %58 = vector.shape_cast %57 : vector<1x32x32xf32> to vector<32x32xf32>
    %cst_47 = arith.constant dense<0.000000e+00> : vector<32x128xf32>
    %59 = tpu.matmul %58, %56, %cst_47 {dimension_numbers = #tpu.dot_dimension_numbers<[1], [0], [0], [1], [0, 0, 1, 1], [], []>} : vector<32x32xf32>, vector<32x128xf32>, vector<32x128xf32> -> vector<32x128xf32>
    %cst_48 = arith.constant 0.000000e+00 : f32
    %60 = vector.broadcast %cst_48 : f32 to vector<32x128xf32>
    %61 = arith.maximumf %59, %60 : vector<32x128xf32>
    %c12 = arith.constant 12 : index
    %c0_49 = arith.constant 0 : index
    %c0_50 = arith.constant 0 : index
    %62 = vector.load %arg2[%c12, %c0_49, %c0_50] : memref<15x32x32xf32, #tpu.memory_space<vmem>>, vector<1x32x32xf32>
    %63 = vector.shape_cast %62 : vector<1x32x32xf32> to vector<32x32xf32>
    %cst_51 = arith.constant dense<0.000000e+00> : vector<32x128xf32>
    %64 = tpu.matmul %63, %61, %cst_51 {dimension_numbers = #tpu.dot_dimension_numbers<[1], [0], [0], [1], [0, 0, 1, 1], [], []>} : vector<32x32xf32>, vector<32x128xf32>, vector<32x128xf32> -> vector<32x128xf32>
    %cst_52 = arith.constant 0.000000e+00 : f32
    %65 = vector.broadcast %cst_52 : f32 to vector<32x128xf32>
    %66 = arith.maximumf %64, %65 : vector<32x128xf32>
    %c13 = arith.constant 13 : index
    %c0_53 = arith.constant 0 : index
    %c0_54 = arith.constant 0 : index
    %67 = vector.load %arg2[%c13, %c0_53, %c0_54] : memref<15x32x32xf32, #tpu.memory_space<vmem>>, vector<1x32x32xf32>
    %68 = vector.shape_cast %67 : vector<1x32x32xf32> to vector<32x32xf32>
    %cst_55 = arith.constant dense<0.000000e+00> : vector<32x128xf32>
    %69 = tpu.matmul %68, %66, %cst_55 {dimension_numbers = #tpu.dot_dimension_numbers<[1], [0], [0], [1], [0, 0, 1, 1], [], []>} : vector<32x32xf32>, vector<32x128xf32>, vector<32x128xf32> -> vector<32x128xf32>
    %cst_56 = arith.constant 0.000000e+00 : f32
    %70 = vector.broadcast %cst_56 : f32 to vector<32x128xf32>
    %71 = arith.maximumf %69, %70 : vector<32x128xf32>
    %c14 = arith.constant 14 : index
    %c0_57 = arith.constant 0 : index
    %c0_58 = arith.constant 0 : index
    %72 = vector.load %arg2[%c14, %c0_57, %c0_58] : memref<15x32x32xf32, #tpu.memory_space<vmem>>, vector<1x32x32xf32>
    %73 = vector.shape_cast %72 : vector<1x32x32xf32> to vector<32x32xf32>
    %cst_59 = arith.constant dense<0.000000e+00> : vector<32x128xf32>
    %74 = tpu.matmul %73, %71, %cst_59 {dimension_numbers = #tpu.dot_dimension_numbers<[1], [0], [0], [1], [0, 0, 1, 1], [], []>} : vector<32x32xf32>, vector<32x128xf32>, vector<32x128xf32> -> vector<32x128xf32>
    %75 = vector.extract_strided_slice %74 {offsets = [0, 0], sizes = [1, 128], strides = [1, 1]} : vector<32x128xf32> to vector<1x128xf32>
    %c0_60 = arith.constant 0 : index
    %c0_61 = arith.constant 0 : index
    %76 = vector.load %arg3[%c0_60, %c0_61] : memref<1x128xf32, #tpu.memory_space<vmem>>, vector<1x128xf32>
    tpu.vector_store %arg3[%c0_60, %c0_61], %75 {strides = array<i32>} : memref<1x128xf32, #tpu.memory_space<vmem>>, vector<1x128xf32>,
    return
  }
  func.func @transform_0(%arg0: i32) -> (i32, i32) {
    %c0_i32 = arith.constant 0 : i32
    %c0_i32_0 = arith.constant 0 : i32
    return %c0_i32, %arg0 : i32, i32
  }
  func.func @transform_1(%arg0: i32) -> (i32, i32, i32) {
    %c0_i32 = arith.constant 0 : i32
    %c0_i32_0 = arith.constant 0 : i32
    %c0_i32_1 = arith.constant 0 : i32
    %c0_i32_2 = arith.constant 0 : i32
    return %c0_i32, %c0_i32_0, %c0_i32_1 : i32, i32, i32
  }
  func.func @transform_2(%arg0: i32) -> (i32, i32) {
    %c0_i32 = arith.constant 0 : i32
    %c0_i32_0 = arith.constant 0 : i32
    return %c0_i32, %arg0 : i32, i32
  }
}

</mosaic_0001>

<bundles_post_ra>
// kernel: traffic_model_forward.1
= control target key start
LH: loop header
LB: loop body
LE: loop exit
PB: predicated region body
PF: predicated region fallthrough
CT: control target
= control target key end

     0   :  { %7 = vsyncpa [#allocation3], 0  ;;  %s2136_s9 = smov [#allocation2]   ;;  %s2228_s0 = inlined_call_operand.vmem [shape: f32[8,128], index: 0, kind: input, shape index: {}]   ;;  %s2229_s1 = inlined_call_operand.hbm [shape: f32[15,32,32], index: 1, kind: input, shape index: {}]   ;;  %s2230_s2 = inlined_call_operand.vmem [shape: f32[1,128], index: 2, kind: output, shape index: {}]  }
   0x1   :  { %s15_s10 = sshll.u32 %s2136_s9, 4  ;;  %s2112_s13 = scalar_lea.hbm %s2229_s1, 7680  ;;  %s16_s10 = int_to_ptr.vmem [resolvable:$true] %s15_s10 }
   0x2   :  { %p2113_p0 = scmp.ne.s32.totalorder %s2229_s1, %s2112_s13  ;;  %p2116_p1 = scmp.lt.u32.totalorder %s2112_s13, %s2229_s1 }
   0x4   :  { %p2118_p2 = pnand %p2116_p1, %p2113_p0 }
   0x6   :  { %2121 = shalt.err (!%p2118_p2)
}
   0x7   :  { %s2122_s18 = scalar_lea.vmem %s16_s10, 7680  ;;  %p2127_p4 = scmp.lt.s32.totalorder %s16_s10, %s16_s10 }
   0x8   :  { %p2123_p3 = scmp.ne.s32.totalorder %s16_s10, %s2122_s18  ;;  %p2128_p5 = scmp.lt.s32.totalorder %s2122_s18, %s2122_s18 }
   0xa   :  { %p2129_p6 = por %p2128_p5, %p2127_p4 }
   0xc   :  { %p2130_p7 = pnand %p2129_p6, %p2123_p3 }
   0xe   :  { %2133 = shalt.err (!%p2130_p7)
}
   0xf   :  { %s2137_s19 = smov 128   ;;  %s2138_s20 = smov 8  }
  0x10   :  { %21 = dma.hbm_to_vmem [thread:$0]  %s2229_s1, 7680, %s16_s10, [#allocation3], %s2137_s19, %s2137_s19, %s2138_s20  }
  0x11   :  { %2134 = dma.done.wait [#allocation3], 7680  }
  0x12   :  { %2135 = vsyncadd [#allocation3], 4294959616  ;;  %vm30_vm0 = vcmask 64512   ;;  %v25_v0 = vld [vmem:[%s2228_s0] sm:$0xff]  ;;  %v27_v2 = vld [vmem:[#allocation2 + $0x8] sm:$0xff]  ;;  %vm137_vm1 = vcmask 261120  }
  0x13   :  { %v26_v1 = vld [vmem:[#allocation2] sm:$0xff]  ;;  %1793 = vmatprep.subr.mxu0 %v25_v0  ;;  %v28_v3 = vld [vmem:[#allocation2 + $0x10] sm:$0xff]  ;;  %v29_v4 = vld [vmem:[#allocation2 + $0x18] sm:$0xff] }
  0x14   :  { %1795 = vmatprep.mubr.msk.f32.mxu0 %vm30_vm0, %v26_v1  ;;  %1794 = vmatpush3.msra.mxu0 %v25_v0  ;;  %v133_v5 = vld [vmem:[#allocation2 + $0x20] sm:$0xff]  ;;  %v134_v16 = vld [vmem:[#allocation2 + $0x28] sm:$0xff]  ;;  %v135_v17 = vld [vmem:[#allocation2 + $0x30] sm:$0xff] }
  0x15   :  { %1796 = vmatmul.mubr.msk.f32.vlgmr.msra.gmra.mrb[0].mxu0 %vm30_vm0, %v27_v2  ;;  %1809 = vmatprep.mubr.msk.f32.mxu1 %vm137_vm1, %v133_v5  ;;  %v136_v18 = vld [vmem:[#allocation2 + $0x38] sm:$0xff]  ;;  %v240_v19 = vld [vmem:[#allocation2 + $0x40] sm:$0xff]  ;;  %v241_v30 = vld [vmem:[#allocation2 + $0x48] sm:$0xff] }
  0x16   :  { %1798 = vmatprep.mubr.msk.f32.mxu0 %vm30_vm0, %v28_v3  ;;  %v242_v31 = vld [vmem:[#allocation2 + $0x50] sm:$0xff]  ;;  %v243_v32 = vld [vmem:[#allocation2 + $0x58] sm:$0xff]  ;;  %v346_v33 = vld [vmem:[#allocation2 + $0x60] sm:$0xff] }
  0x17   :  { %v347_v44 = vld [vmem:[#allocation2 + $0x68] sm:$0xff]  ;;  %v348_v45 = vld [vmem:[#allocation2 + $0x70] sm:$0xff]  ;;  %v349_v46 = vld [vmem:[#allocation2 + $0x78] sm:$0xff] }
  0x18   :  { %v452_v47 = vld [vmem:[#allocation2 + $0x80] sm:$0xff]  ;;  %v453_v58 = vld [vmem:[#allocation2 + $0x88] sm:$0xff]  ;;  %v454_v59 = vld [vmem:[#allocation2 + $0x90] sm:$0xff] }
  0x19   :  { %1799 = vmatmul.mubr.msk.f32.gmra.mrb[2].mxu0 %vm30_vm0, %v29_v4  ;;  %v455_v60 = vld [vmem:[#allocation2 + $0x98] sm:$0xff]  ;;  %v558_v61 = vld [vmem:[#allocation2 + $0xa0] sm:$0xff] }
  0x1a   :  { %1823 = vmatprep.mubr.msk.f32.mxu0 %vm137_vm1, %v240_v19 }
  0xe8   :  { %v1797_v6 = vpop.f32.mrb[0].mxu0 }
  0xe9   :  { %v129_v7 = vmax.f32 %v1797_v6, 0.0  ;;  %v109_v8 = vpop.f32.mrb[1].mxu0 }
  0xea   :  { %v128_v9 = vmax.f32 %v109_v8, 0.0  ;;  %v559_v8 = vld [vmem:[#allocation2 + $0xa8] sm:$0xff] }
  0xec   :  { %v1800_v10 = vpop.f32.mrb[2].mxu0  ;;  %v1997_v11 = vpack.c.bf16 %v129_v7, %v128_v9  ;;  %v560_v9 = vld [vmem:[#allocation2 + $0xb0] sm:$0xff] }
  0xed   :  { %v131_v12 = vmax.f32 %v1800_v10, 0.0  ;;  %v119_v13 = vpop.f32.mrb[3].mxu0  ;;  %v561_v10 = vld [vmem:[#allocation2 + $0xb8] sm:$0xff] }
  0xee   :  { %v130_v14 = vmax.f32 %v119_v13, 0.0  ;;  %1998 = vmatprep.subr.bf16.mxu1 %v1997_v11 }
  0xef   :  { %2000 = vmatpush3.bf16.msra.mxu1 %v1997_v11  ;;  %v664_v11 = vld [vmem:[#allocation2 + $0xc0] sm:$0xff] }
  0xf0   :  { %v2001_v15 = vpack.c.bf16 %v131_v12, %v130_v14 }
  0xf2   :  { %2002 = vmatprep.subr.bf16.mxu1 %v2001_v15 }
  0xf3   :  { %2004 = vmatpush3.bf16.msra.mxu1 %v2001_v15 }
  0xf6   :  { %1810 = vmatmul.mubr.msk.f32.vlgmr.msra.gmra.mrb[0].mxu1 %vm137_vm1, %v134_v16 }
  0xf7   :  { %1812 = vmatprep.mubr.msk.f32.mxu1 %vm137_vm1, %v135_v17 }
  0xfa   :  { %1813 = vmatmul.mubr.msk.f32.gmra.mrb[2].mxu1 %vm137_vm1, %v136_v18 }
  0xfb   :  { %1837 = vmatprep.mubr.msk.f32.mxu1 %vm137_vm1, %v346_v33 }
 0x1c9   :  { %v1811_v20 = vpop.f32.mrb[0].mxu1 }
 0x1ca   :  { %v236_v21 = vmax.f32 %v1811_v20, 0.0  ;;  %v216_v22 = vpop.f32.mrb[1].mxu1 }
 0x1cb   :  { %v235_v23 = vmax.f32 %v216_v22, 0.0  ;;  %v665_v22 = vld [vmem:[#allocation2 + $0xc8] sm:$0xff] }
 0x1cd   :  { %v2005_v24 = vpack.c.bf16 %v236_v21, %v235_v23  ;;  %v1814_v25 = vpop.f32.mrb[2].mxu1  ;;  %v666_v23 = vld [vmem:[#allocation2 + $0xd0] sm:$0xff] }
 0x1ce   :  { %v238_v26 = vmax.f32 %v1814_v25, 0.0  ;;  %v226_v27 = vpop.f32.mrb[3].mxu1  ;;  %v770_v25 = vld [vmem:[#allocation2 + $0xe0] sm:$0xff] }
 0x1cf   :  { %v237_v28 = vmax.f32 %v226_v27, 0.0  ;;  %2006 = vmatprep.subr.bf16.mxu0 %v2005_v24 }
 0x1d0   :  { %2008 = vmatpush3.bf16.msra.mxu0 %v2005_v24  ;;  %v667_v24 = vld [vmem:[#allocation2 + $0xd8] sm:$0xff] }
 0x1d1   :  { %v2009_v29 = vpack.c.bf16 %v238_v26, %v237_v28 }
 0x1d3   :  { %2010 = vmatprep.subr.bf16.mxu0 %v2009_v29 }
 0x1d4   :  { %2012 = vmatpush3.bf16.msra.mxu0 %v2009_v29 }
 0x1d7   :  { %1824 = vmatmul.mubr.msk.f32.vlgmr.msra.gmra.mrb[4].mxu0 %vm137_vm1, %v241_v30 }
 0x1d8   :  { %1826 = vmatprep.mubr.msk.f32.mxu0 %vm137_vm1, %v242_v31 }
 0x1db   :  { %1827 = vmatmul.mubr.msk.f32.gmra.mrb[6].mxu0 %vm137_vm1, %v243_v32 }
 0x1dc   :  { %1851 = vmatprep.mubr.msk.f32.mxu0 %vm137_vm1, %v452_v47 }
 0x2aa   :  { %v1825_v34 = vpop.f32.mrb[4].mxu0 }
 0x2ab   :  { %v342_v35 = vmax.f32 %v1825_v34, 0.0  ;;  %v322_v36 = vpop.f32.mrb[5].mxu0 }
 0x2ac   :  { %v341_v37 = vmax.f32 %v322_v36, 0.0  ;;  %v771_v36 = vld [vmem:[#allocation2 + $0xe8] sm:$0xff] }
 0x2ae   :  { %v2013_v38 = vpack.c.bf16 %v342_v35, %v341_v37  ;;  %v1828_v39 = vpop.f32.mrb[6].mxu0  ;;  %v772_v37 = vld [vmem:[#allocation2 + $0xf0] sm:$0xff] }
 0x2af   :  { %v344_v40 = vmax.f32 %v1828_v39, 0.0  ;;  %v332_v41 = vpop.f32.mrb[7].mxu0  ;;  %v876_v39 = vld [vmem:[#allocation2 + $0x100] sm:$0xff] }
 0x2b0   :  { %v343_v42 = vmax.f32 %v332_v41, 0.0  ;;  %2014 = vmatprep.subr.bf16.mxu1 %v2013_v38 }
 0x2b1   :  { %2016 = vmatpush3.bf16.msra.mxu1 %v2013_v38  ;;  %v773_v38 = vld [vmem:[#allocation2 + $0xf8] sm:$0xff] }
 0x2b2   :  { %v2017_v43 = vpack.c.bf16 %v344_v40, %v343_v42 }
 0x2b4   :  { %2018 = vmatprep.subr.bf16.mxu1 %v2017_v43 }
 0x2b5   :  { %2020 = vmatpush3.bf16.msra.mxu1 %v2017_v43 }
 0x2b8   :  { %1838 = vmatmul.mubr.msk.f32.vlgmr.msra.gmra.mrb[4].mxu1 %vm137_vm1, %v347_v44 }
 0x2b9   :  { %1840 = vmatprep.mubr.msk.f32.mxu1 %vm137_vm1, %v348_v45 }
 0x2bc   :  { %1841 = vmatmul.mubr.msk.f32.gmra.mrb[6].mxu1 %vm137_vm1, %v349_v46 }
 0x2bd   :  { %1865 = vmatprep.mubr.msk.f32.mxu1 %vm137_vm1, %v558_v61 }
 0x38b   :  { %v1839_v48 = vpop.f32.mrb[4].mxu1 }
 0x38c   :  { %v448_v49 = vmax.f32 %v1839_v48, 0.0  ;;  %v428_v50 = vpop.f32.mrb[5].mxu1 }
 0x38d   :  { %v447_v51 = vmax.f32 %v428_v50, 0.0  ;;  %v877_v50 = vld [vmem:[#allocation2 + $0x108] sm:$0xff] }
 0x38f   :  { %v2021_v52 = vpack.c.bf16 %v448_v49, %v447_v51  ;;  %v1842_v53 = vpop.f32.mrb[6].mxu1  ;;  %v878_v51 = vld [vmem:[#allocation2 + $0x110] sm:$0xff] }
 0x390   :  { %v450_v54 = vmax.f32 %v1842_v53, 0.0  ;;  %v438_v55 = vpop.f32.mrb[7].mxu1  ;;  %v982_v53 = vld [vmem:[#allocation2 + $0x120] sm:$0xff] }
 0x391   :  { %v449_v56 = vmax.f32 %v438_v55, 0.0  ;;  %2022 = vmatprep.subr.bf16.mxu0 %v2021_v52 }
 0x392   :  { %2024 = vmatpush3.bf16.msra.mxu0 %v2021_v52  ;;  %v879_v52 = vld [vmem:[#allocation2 + $0x118] sm:$0xff] }
 0x393   :  { %v2025_v57 = vpack.c.bf16 %v450_v54, %v449_v56 }
 0x395   :  { %2026 = vmatprep.subr.bf16.mxu0 %v2025_v57 }
 0x396   :  { %2028 = vmatpush3.bf16.msra.mxu0 %v2025_v57 }
 0x399   :  { %1852 = vmatmul.mubr.msk.f32.vlgmr.msra.gmra.mrb[8].mxu0 %vm137_vm1, %v453_v58 }
 0x39a   :  { %1854 = vmatprep.mubr.msk.f32.mxu0 %vm137_vm1, %v454_v59 }
 0x39d   :  { %1855 = vmatmul.mubr.msk.f32.gmra.mrb[10].mxu0 %vm137_vm1, %v455_v60 }
 0x39e   :  { %1879 = vmatprep.mubr.msk.f32.mxu0 %vm137_vm1, %v664_v11 }
 0x46c   :  { %v1853_v62 = vpop.f32.mrb[8].mxu0 }
 0x46d   :  { %v554_v63 = vmax.f32 %v1853_v62, 0.0  ;;  %v534_v0 = vpop.f32.mrb[9].mxu0 }
 0x46e   :  { %v553_v1 = vmax.f32 %v534_v0, 0.0  ;;  %v983_v0 = vld [vmem:[#allocation2 + $0x128] sm:$0xff] }
 0x470   :  { %v2029_v2 = vpack.c.bf16 %v554_v63, %v553_v1  ;;  %v1856_v3 = vpop.f32.mrb[10].mxu0  ;;  %v984_v1 = vld [vmem:[#allocation2 + $0x130] sm:$0xff] }
 0x471   :  { %v556_v4 = vmax.f32 %v1856_v3, 0.0  ;;  %v544_v5 = vpop.f32.mrb[11].mxu0  ;;  %v1088_v3 = vld [vmem:[#allocation2 + $0x140] sm:$0xff] }
 0x472   :  { %v555_v6 = vmax.f32 %v544_v5, 0.0  ;;  %2030 = vmatprep.subr.bf16.mxu1 %v2029_v2 }
 0x473   :  { %2032 = vmatpush3.bf16.msra.mxu1 %v2029_v2  ;;  %v985_v2 = vld [vmem:[#allocation2 + $0x138] sm:$0xff] }
 0x474   :  { %v2033_v7 = vpack.c.bf16 %v556_v4, %v555_v6 }
 0x476   :  { %2034 = vmatprep.subr.bf16.mxu1 %v2033_v7 }
 0x477   :  { %2036 = vmatpush3.bf16.msra.mxu1 %v2033_v7 }
 0x47a   :  { %1866 = vmatmul.mubr.msk.f32.vlgmr.msra.gmra.mrb[8].mxu1 %vm137_vm1, %v559_v8 }
 0x47b   :  { %1868 = vmatprep.mubr.msk.f32.mxu1 %vm137_vm1, %v560_v9 }
 0x47e   :  { %1869 = vmatmul.mubr.msk.f32.gmra.mrb[10].mxu1 %vm137_vm1, %v561_v10 }
 0x47f   :  { %1893 = vmatprep.mubr.msk.f32.mxu1 %vm137_vm1, %v770_v25 }
 0x54d   :  { %v1867_v12 = vpop.f32.mrb[8].mxu1 }
 0x54e   :  { %v660_v13 = vmax.f32 %v1867_v12, 0.0  ;;  %v640_v14 = vpop.f32.mrb[9].mxu1 }
 0x54f   :  { %v659_v15 = vmax.f32 %v640_v14, 0.0  ;;  %v1089_v14 = vld [vmem:[#allocation2 + $0x148] sm:$0xff] }
 0x551   :  { %v2037_v16 = vpack.c.bf16 %v660_v13, %v659_v15  ;;  %v1870_v17 = vpop.f32.mrb[10].mxu1  ;;  %v1090_v15 = vld [vmem:[#allocation2 + $0x150] sm:$0xff] }
 0x552   :  { %v662_v18 = vmax.f32 %v1870_v17, 0.0  ;;  %v650_v19 = vpop.f32.mrb[11].mxu1  ;;  %v1194_v17 = vld [vmem:[#allocation2 + $0x160] sm:$0xff] }
 0x553   :  { %v661_v20 = vmax.f32 %v650_v19, 0.0  ;;  %2038 = vmatprep.subr.bf16.mxu0 %v2037_v16 }
 0x554   :  { %2040 = vmatpush3.bf16.msra.mxu0 %v2037_v16  ;;  %v1091_v16 = vld [vmem:[#allocation2 + $0x158] sm:$0xff] }
 0x555   :  { %v2041_v21 = vpack.c.bf16 %v662_v18, %v661_v20 }
 0x557   :  { %2042 = vmatprep.subr.bf16.mxu0 %v2041_v21 }
 0x558   :  { %2044 = vmatpush3.bf16.msra.mxu0 %v2041_v21 }
 0x55b   :  { %1880 = vmatmul.mubr.msk.f32.vlgmr.msra.gmra.mrb[12].mxu0 %vm137_vm1, %v665_v22 }
 0x55c   :  { %1882 = vmatprep.mubr.msk.f32.mxu0 %vm137_vm1, %v666_v23 }
 0x55f   :  { %1883 = vmatmul.mubr.msk.f32.gmra.mrb[14].mxu0 %vm137_vm1, %v667_v24 }
 0x560   :  { %1907 = vmatprep.mubr.msk.f32.mxu0 %vm137_vm1, %v876_v39 }
 0x62e   :  { %v1881_v26 = vpop.f32.mrb[12].mxu0 }
 0x62f   :  { %v766_v27 = vmax.f32 %v1881_v26, 0.0  ;;  %v746_v28 = vpop.f32.mrb[13].mxu0 }
 0x630   :  { %v765_v29 = vmax.f32 %v746_v28, 0.0  ;;  %v1195_v28 = vld [vmem:[#allocation2 + $0x168] sm:$0xff] }
 0x632   :  { %v2045_v30 = vpack.c.bf16 %v766_v27, %v765_v29  ;;  %v1884_v31 = vpop.f32.mrb[14].mxu0  ;;  %v1196_v29 = vld [vmem:[#allocation2 + $0x170] sm:$0xff] }
 0x633   :  { %v768_v32 = vmax.f32 %v1884_v31, 0.0  ;;  %v756_v33 = vpop.f32.mrb[15].mxu0  ;;  %v1300_v31 = vld [vmem:[#allocation2 + $0x180] sm:$0xff] }
 0x634   :  { %v767_v34 = vmax.f32 %v756_v33, 0.0  ;;  %2046 = vmatprep.subr.bf16.mxu1 %v2045_v30 }
 0x635   :  { %2048 = vmatpush3.bf16.msra.mxu1 %v2045_v30  ;;  %v1197_v30 = vld [vmem:[#allocation2 + $0x178] sm:$0xff] }
 0x636   :  { %v2049_v35 = vpack.c.bf16 %v768_v32, %v767_v34 }
 0x638   :  { %2050 = vmatprep.subr.bf16.mxu1 %v2049_v35 }
 0x639   :  { %2052 = vmatpush3.bf16.msra.mxu1 %v2049_v35 }
 0x63c   :  { %1894 = vmatmul.mubr.msk.f32.vlgmr.msra.gmra.mrb[12].mxu1 %vm137_vm1, %v771_v36 }
 0x63d   :  { %1896 = vmatprep.mubr.msk.f32.mxu1 %vm137_vm1, %v772_v37 }
 0x640   :  { %1897 = vmatmul.mubr.msk.f32.gmra.mrb[14].mxu1 %vm137_vm1, %v773_v38 }
 0x641   :  { %1921 = vmatprep.mubr.msk.f32.mxu1 %vm137_vm1, %v982_v53 }
 0x70f   :  { %v1895_v40 = vpop.f32.mrb[12].mxu1 }
 0x710   :  { %v872_v41 = vmax.f32 %v1895_v40, 0.0  ;;  %v852_v42 = vpop.f32.mrb[13].mxu1 }
 0x711   :  { %v871_v43 = vmax.f32 %v852_v42, 0.0  ;;  %v1301_v42 = vld [vmem:[#allocation2 + $0x188] sm:$0xff] }
 0x713   :  { %v2053_v44 = vpack.c.bf16 %v872_v41, %v871_v43  ;;  %v1898_v45 = vpop.f32.mrb[14].mxu1  ;;  %v1302_v43 = vld [vmem:[#allocation2 + $0x190] sm:$0xff] }
 0x714   :  { %v874_v46 = vmax.f32 %v1898_v45, 0.0  ;;  %v862_v47 = vpop.f32.mrb[15].mxu1  ;;  %v1406_v45 = vld [vmem:[#allocation2 + $0x1a0] sm:$0xff] }
 0x715   :  { %v873_v48 = vmax.f32 %v862_v47, 0.0  ;;  %2054 = vmatprep.subr.bf16.mxu0 %v2053_v44 }
 0x716   :  { %2056 = vmatpush3.bf16.msra.mxu0 %v2053_v44  ;;  %v1303_v44 = vld [vmem:[#allocation2 + $0x198] sm:$0xff] }
 0x717   :  { %v2057_v49 = vpack.c.bf16 %v874_v46, %v873_v48 }
 0x719   :  { %2058 = vmatprep.subr.bf16.mxu0 %v2057_v49 }
 0x71a   :  { %2060 = vmatpush3.bf16.msra.mxu0 %v2057_v49 }
 0x71d   :  { %1908 = vmatmul.mubr.msk.f32.vlgmr.msra.gmra.mrb[16].mxu0 %vm137_vm1, %v877_v50 }
 0x71e   :  { %1910 = vmatprep.mubr.msk.f32.mxu0 %vm137_vm1, %v878_v51 }
 0x721   :  { %1911 = vmatmul.mubr.msk.f32.gmra.mrb[18].mxu0 %vm137_vm1, %v879_v52 }
 0x722   :  { %1935 = vmatprep.mubr.msk.f32.mxu0 %vm137_vm1, %v1088_v3 }
 0x7f0   :  { %v1909_v54 = vpop.f32.mrb[16].mxu0 }
 0x7f1   :  { %v978_v55 = vmax.f32 %v1909_v54, 0.0  ;;  %v958_v56 = vpop.f32.mrb[17].mxu0 }
 0x7f2   :  { %v977_v57 = vmax.f32 %v958_v56, 0.0  ;;  %v1407_v56 = vld [vmem:[#allocation2 + $0x1a8] sm:$0xff] }
 0x7f4   :  { %v2061_v58 = vpack.c.bf16 %v978_v55, %v977_v57  ;;  %v1912_v59 = vpop.f32.mrb[18].mxu0  ;;  %v1408_v57 = vld [vmem:[#allocation2 + $0x1b0] sm:$0xff] }
 0x7f5   :  { %v980_v60 = vmax.f32 %v1912_v59, 0.0  ;;  %v968_v61 = vpop.f32.mrb[19].mxu0  ;;  %v1512_v59 = vld [vmem:[#allocation2 + $0x1c0] sm:$0xff] }
 0x7f6   :  { %v979_v62 = vmax.f32 %v968_v61, 0.0  ;;  %2062 = vmatprep.subr.bf16.mxu1 %v2061_v58 }
 0x7f7   :  { %2064 = vmatpush3.bf16.msra.mxu1 %v2061_v58  ;;  %v1409_v58 = vld [vmem:[#allocation2 + $0x1b8] sm:$0xff] }
 0x7f8   :  { %v2065_v63 = vpack.c.bf16 %v980_v60, %v979_v62 }
 0x7fa   :  { %2066 = vmatprep.subr.bf16.mxu1 %v2065_v63 }
 0x7fb   :  { %2068 = vmatpush3.bf16.msra.mxu1 %v2065_v63 }
 0x7fe   :  { %1922 = vmatmul.mubr.msk.f32.vlgmr.msra.gmra.mrb[16].mxu1 %vm137_vm1, %v983_v0 }
 0x7ff   :  { %1924 = vmatprep.mubr.msk.f32.mxu1 %vm137_vm1, %v984_v1 }
 0x802   :  { %1925 = vmatmul.mubr.msk.f32.gmra.mrb[18].mxu1 %vm137_vm1, %v985_v2 }
 0x803   :  { %1949 = vmatprep.mubr.msk.f32.mxu1 %vm137_vm1, %v1194_v17 }
 0x8d1   :  { %v1923_v4 = vpop.f32.mrb[16].mxu1 }
 0x8d2   :  { %v1084_v5 = vmax.f32 %v1923_v4, 0.0  ;;  %v1064_v6 = vpop.f32.mrb[17].mxu1 }
 0x8d3   :  { %v1083_v7 = vmax.f32 %v1064_v6, 0.0  ;;  %v1513_v6 = vld [vmem:[#allocation2 + $0x1c8] sm:$0xff] }
 0x8d5   :  { %v2069_v8 = vpack.c.bf16 %v1084_v5, %v1083_v7  ;;  %v1926_v9 = vpop.f32.mrb[18].mxu1  ;;  %v1514_v7 = vld [vmem:[#allocation2 + $0x1d0] sm:$0xff] }
 0x8d6   :  { %v1086_v10 = vmax.f32 %v1926_v9, 0.0  ;;  %v1074_v11 = vpop.f32.mrb[19].mxu1 }
 0x8d7   :  { %v1085_v12 = vmax.f32 %v1074_v11, 0.0  ;;  %2070 = vmatprep.subr.bf16.mxu0 %v2069_v8 }
 0x8d8   :  { %2072 = vmatpush3.bf16.msra.mxu0 %v2069_v8  ;;  %v1515_v8 = vld [vmem:[#allocation2 + $0x1d8] sm:$0xff] }
 0x8d9   :  { %v2073_v13 = vpack.c.bf16 %v1086_v10, %v1085_v12 }
 0x8db   :  { %2074 = vmatprep.subr.bf16.mxu0 %v2073_v13 }
 0x8dc   :  { %2076 = vmatpush3.bf16.msra.mxu0 %v2073_v13 }
 0x8df   :  { %1936 = vmatmul.mubr.msk.f32.vlgmr.msra.gmra.mrb[20].mxu0 %vm137_vm1, %v1089_v14 }
 0x8e0   :  { %1938 = vmatprep.mubr.msk.f32.mxu0 %vm137_vm1, %v1090_v15 }
 0x8e3   :  { %1939 = vmatmul.mubr.msk.f32.gmra.mrb[22].mxu0 %vm137_vm1, %v1091_v16 }
 0x8e4   :  { %1963 = vmatprep.mubr.msk.f32.mxu0 %vm137_vm1, %v1300_v31 }
 0x9b2   :  { %v1937_v18 = vpop.f32.mrb[20].mxu0 }
 0x9b3   :  { %v1190_v19 = vmax.f32 %v1937_v18, 0.0  ;;  %v1170_v20 = vpop.f32.mrb[21].mxu0 }
 0x9b4   :  { %v1189_v21 = vmax.f32 %v1170_v20, 0.0 }
 0x9b6   :  { %v2077_v22 = vpack.c.bf16 %v1190_v19, %v1189_v21  ;;  %v1940_v23 = vpop.f32.mrb[22].mxu0 }
 0x9b7   :  { %v1192_v24 = vmax.f32 %v1940_v23, 0.0  ;;  %v1180_v25 = vpop.f32.mrb[23].mxu0 }
 0x9b8   :  { %v1191_v26 = vmax.f32 %v1180_v25, 0.0  ;;  %2078 = vmatprep.subr.bf16.mxu1 %v2077_v22 }
 0x9b9   :  { %2080 = vmatpush3.bf16.msra.mxu1 %v2077_v22 }
 0x9ba   :  { %v2081_v27 = vpack.c.bf16 %v1192_v24, %v1191_v26 }
 0x9bc   :  { %2082 = vmatprep.subr.bf16.mxu1 %v2081_v27 }
 0x9bd   :  { %2084 = vmatpush3.bf16.msra.mxu1 %v2081_v27 }
 0x9c0   :  { %1950 = vmatmul.mubr.msk.f32.vlgmr.msra.gmra.mrb[20].mxu1 %vm137_vm1, %v1195_v28 }
 0x9c1   :  { %1952 = vmatprep.mubr.msk.f32.mxu1 %vm137_vm1, %v1196_v29 }
 0x9c4   :  { %1953 = vmatmul.mubr.msk.f32.gmra.mrb[22].mxu1 %vm137_vm1, %v1197_v30 }
 0x9c5   :  { %1977 = vmatprep.mubr.msk.f32.mxu1 %vm137_vm1, %v1406_v45 }
 0xa93   :  { %v1951_v32 = vpop.f32.mrb[20].mxu1 }
 0xa94   :  { %v1296_v33 = vmax.f32 %v1951_v32, 0.0  ;;  %v1276_v34 = vpop.f32.mrb[21].mxu1 }
 0xa95   :  { %v1295_v35 = vmax.f32 %v1276_v34, 0.0 }
 0xa97   :  { %v2085_v36 = vpack.c.bf16 %v1296_v33, %v1295_v35  ;;  %v1954_v37 = vpop.f32.mrb[22].mxu1 }
 0xa98   :  { %v1298_v38 = vmax.f32 %v1954_v37, 0.0  ;;  %v1286_v39 = vpop.f32.mrb[23].mxu1 }
 0xa99   :  { %v1297_v40 = vmax.f32 %v1286_v39, 0.0  ;;  %2086 = vmatprep.subr.bf16.mxu0 %v2085_v36 }
 0xa9a   :  { %2088 = vmatpush3.bf16.msra.mxu0 %v2085_v36 }
 0xa9b   :  { %v2089_v41 = vpack.c.bf16 %v1298_v38, %v1297_v40 }
 0xa9d   :  { %2090 = vmatprep.subr.bf16.mxu0 %v2089_v41 }
 0xa9e   :  { %2092 = vmatpush3.bf16.msra.mxu0 %v2089_v41 }
 0xaa1   :  { %1964 = vmatmul.mubr.msk.f32.vlgmr.msra.gmra.mrb[24].mxu0 %vm137_vm1, %v1301_v42 }
 0xaa2   :  { %1966 = vmatprep.mubr.msk.f32.mxu0 %vm137_vm1, %v1302_v43 }
 0xaa5   :  { %1967 = vmatmul.mubr.msk.f32.gmra.mrb[26].mxu0 %vm137_vm1, %v1303_v44 }
 0xaa6   :  { %1991 = vmatprep.mubr.msk.f32.mxu0 %vm137_vm1, %v1512_v59 }
 0xb74   :  { %v1965_v46 = vpop.f32.mrb[24].mxu0 }
 0xb75   :  { %v1402_v47 = vmax.f32 %v1965_v46, 0.0  ;;  %v1382_v48 = vpop.f32.mrb[25].mxu0 }
 0xb76   :  { %v1401_v49 = vmax.f32 %v1382_v48, 0.0 }
 0xb78   :  { %v2093_v50 = vpack.c.bf16 %v1402_v47, %v1401_v49  ;;  %v1968_v51 = vpop.f32.mrb[26].mxu0 }
 0xb79   :  { %v1404_v52 = vmax.f32 %v1968_v51, 0.0  ;;  %v1392_v53 = vpop.f32.mrb[27].mxu0 }
 0xb7a   :  { %v1403_v54 = vmax.f32 %v1392_v53, 0.0  ;;  %2094 = vmatprep.subr.bf16.mxu1 %v2093_v50 }
 0xb7b   :  { %2096 = vmatpush3.bf16.msra.mxu1 %v2093_v50 }
 0xb7c   :  { %v2097_v55 = vpack.c.bf16 %v1404_v52, %v1403_v54 }
 0xb7e   :  { %2098 = vmatprep.subr.bf16.mxu1 %v2097_v55 }
 0xb7f   :  { %2100 = vmatpush3.bf16.msra.mxu1 %v2097_v55 }
 0xb82   :  { %1978 = vmatmul.mubr.msk.f32.vlgmr.msra.gmra.mrb[24].mxu1 %vm137_vm1, %v1407_v56 }
 0xb83   :  { %1980 = vmatprep.mubr.msk.f32.mxu1 %vm137_vm1, %v1408_v57 }
 0xb86   :  { %1981 = vmatmul.mubr.msk.f32.gmra.mrb[26].mxu1 %vm137_vm1, %v1409_v58 }
 0xc55   :  { %v1979_v60 = vpop.f32.mrb[24].mxu1 }
 0xc56   :  { %v1508_v61 = vmax.f32 %v1979_v60, 0.0  ;;  %v1488_v62 = vpop.f32.mrb[25].mxu1 }
 0xc57   :  { %v1507_v63 = vmax.f32 %v1488_v62, 0.0 }
 0xc59   :  { %v2101_v0 = vpack.c.bf16 %v1508_v61, %v1507_v63  ;;  %v1982_v1 = vpop.f32.mrb[26].mxu1 }
 0xc5a   :  { %v1510_v2 = vmax.f32 %v1982_v1, 0.0  ;;  %v1498_v3 = vpop.f32.mrb[27].mxu1 }
 0xc5b   :  { %v1509_v4 = vmax.f32 %v1498_v3, 0.0  ;;  %2102 = vmatprep.subr.bf16.mxu0 %v2101_v0 }
 0xc5c   :  { %2104 = vmatpush3.bf16.msra.mxu0 %v2101_v0 }
 0xc5d   :  { %v2105_v5 = vpack.c.bf16 %v1510_v2, %v1509_v4 }
 0xc5f   :  { %2106 = vmatprep.subr.bf16.mxu0 %v2105_v5 }
 0xc60   :  { %2108 = vmatpush3.bf16.msra.mxu0 %v2105_v5 }
 0xc63   :  { %1992 = vmatmul.mubr.msk.f32.vlgmr.msra.gmra.mrb[28].mxu0 %vm137_vm1, %v1513_v6 }
 0xc64   :  { %1994 = vmatprep.mubr.msk.f32.mxu0 %vm137_vm1, %v1514_v7 }
 0xc67   :  { %1995 = vmatmul.mubr.msk.f32.gmra.mrb[30].mxu0 %vm137_vm1, %v1515_v8 }
 0xd36   :  { %v1993_v9 = vpop.f32.mrb[28].mxu0 }
 0xd37   :  { %v1594_v10 = vpop.f32.mrb[29].mxu0 }
 0xd38   :  { %1610 = vst [vmem:[%s2230_s2] sm:$0x1] %v1594_v10 }
 0xd3a   :  { %v1996_v11 = vpop.f32.mrb[30].mxu0 }
 0xd3b   :  { %v1603_v12 = vpop.f32.mrb[31].mxu0 }
 0xd3c   :  { %1615 = vsyncpa [#allocation3], 1 }

</bundles_post_ra>
